<compile_context>
chip_gen: v7x
topology: tpu7x:2x2x1
jax: 0.10.0
libtpu: 0.0.40
codegen_flags: <defaults>
</compile_context>

<pallas_src>
import functools

import jax
import jax.numpy as jnp
from jax import lax
from jax.experimental import pallas as pl
from jax.experimental.pallas import tpu as pltpu


def _round_up(x, m):
    return ((x + m - 1) // m) * m


def _ncf_kernel(uid_ref, iid_ref,                       # (TB, 1) int32 id blocks (VMEM)
                utab_ref, itab_ref,                     # padded embedding tables (VMEM)
                w1u_ref, w1i_ref, b1_ref,               # Linear(64->64), w1 split
                w2_ref, b2_ref,                         # Linear(64->16)
                w3_ref, b3_ref,                         # Linear(16->1); b3 in SMEM
                o_ref):                                 # (1, TB) lane-dense output
    TB = uid_ref.shape[0]
    nu_pad = utab_ref.shape[0]
    ni_pad = itab_ref.shape[0]

    # One-hot MXU gather: VPU compares build the masks, MXU does the row selection.
    # TODO(synk): for embedding tables too large for VMEM residency, switch this to
    # a manual-DMA row gather (memory_space=pl.ANY + pltpu.make_async_copy).
    uid = uid_ref[...]                                              # (TB, 1)
    iid = iid_ref[...]                                              # (TB, 1)
    onehot_u = (lax.broadcasted_iota(jnp.int32, (TB, nu_pad), 1) == uid
                ).astype(jnp.float32)                               # (TB, NU_pad)
    onehot_i = (lax.broadcasted_iota(jnp.int32, (TB, ni_pad), 1) == iid
                ).astype(jnp.float32)                               # (TB, NI_pad)
    u = jnp.dot(onehot_u, utab_ref[...], preferred_element_type=jnp.float32)   # (TB, E)
    it = jnp.dot(onehot_i, itab_ref[...], preferred_element_type=jnp.float32)  # (TB, E)

    # Linear(2E -> 64) + ReLU, with the torch concat folded into a split matmul.
    h1 = jnp.dot(u, w1u_ref[...], preferred_element_type=jnp.float32)
    h1 = h1 + jnp.dot(it, w1i_ref[...], preferred_element_type=jnp.float32)
    h1 = jnp.maximum(h1 + b1_ref[...], 0.0)

    # Linear(64 -> 16) + ReLU
    h2 = jnp.dot(h1, w2_ref[...], preferred_element_type=jnp.float32) + b2_ref[...]
    h2 = jnp.maximum(h2, 0.0)

    # Linear(16 -> 1) computed as (1,16) @ (TB,16)^T -> (1, TB): the result is
    # lane-dense, so the HBM writeback is a full-lane store instead of vst.msk.
    out = lax.dot_general(
        w3_ref[...], h2,
        dimension_numbers=(((1,), (1,)), ((), ())),
        preferred_element_type=jnp.float32,
    )
    o_ref[...] = (out + b3_ref[0]).astype(o_ref.dtype)


@functools.partial(jax.jit, static_argnames=("tb",))
def ncf_forward(user_ids, item_ids, params, *, tb=512):
    """Full NCF forward (embedding gather + 3-layer MLP) in one Pallas kernel."""
    B = user_ids.shape[0]
    user_tbl = params["user_embedding"]
    item_tbl = params["item_embedding"]
    n_users, E = user_tbl.shape
    n_items = item_tbl.shape[0]
    H1 = params["w1_user"].shape[1]
    H2 = params["w2"].shape[1]

    # Lane/sublane-friendly batch padding: tiles are multiples of 128 so the
    # (1, TB) output block is always an unmasked full-lane store, and TB is chosen
    # so mid/large batches produce >= 2 grid steps (up to 8) for megacore sharding.
    B_pad = _round_up(B, 128)
    TB = min(tb, max(128, _round_up(B_pad // 8, 128)))
    B_pad = _round_up(B_pad, TB)

    uid = user_ids.astype(jnp.int32).reshape(B, 1)
    iid = item_ids.astype(jnp.int32).reshape(B, 1)
    if B_pad != B:
        uid = jnp.pad(uid, ((0, B_pad - B), (0, 0)))   # padded rows gather row 0
        iid = jnp.pad(iid, ((0, B_pad - B), (0, 0)))   # and are sliced off below

    # Zero-pad the (tiny, VMEM-resident) tables to a multiple of 128 rows so the
    # one-hot gather contraction dim is lane-aligned.
    NU_pad = _round_up(n_users, 128)
    NI_pad = _round_up(n_items, 128)
    utab = jnp.pad(user_tbl, ((0, NU_pad - n_users), (0, 0)))
    itab = jnp.pad(item_tbl, ((0, NI_pad - n_items), (0, 0)))

    const = lambda i: (0, 0)      # weights/tables: VMEM-resident block
    row = lambda i: (i, 0)        # per-tile id blocks
    grid_spec = pltpu.PrefetchScalarGridSpec(
        num_scalar_prefetch=0,
        grid=(B_pad // TB,),
        in_specs=[
            pl.BlockSpec((TB, 1), row),                 # user ids
            pl.BlockSpec((TB, 1), row),                 # item ids
            pl.BlockSpec((NU_pad, E), const),           # user embedding table
            pl.BlockSpec((NI_pad, E), const),           # item embedding table
            pl.BlockSpec((E, H1), const),               # w1_user
            pl.BlockSpec((E, H1), const),               # w1_item
            pl.BlockSpec((1, H1), const),               # b1
            pl.BlockSpec((H1, H2), const),              # w2
            pl.BlockSpec((1, H2), const),               # b2
            pl.BlockSpec((1, H2), const),               # w3 (torch layout (1,16))
            pl.BlockSpec(memory_space=pltpu.MemorySpace.SMEM),  # b3 scalar
        ],
        out_specs=pl.BlockSpec((1, TB), lambda i: (0, i)),
    )

    weight_elems = 2 * E * H1 + H1 + H1 * H2 + H2 + H2 + 1
    cost = pl.CostEstimate(
        flops=2 * B_pad * (NU_pad * E + NI_pad * E + 2 * E * H1 + H1 * H2 + H2),
        transcendentals=0,
        bytes_accessed=(B_pad * 2 * 4                     # ids
                        + (NU_pad + NI_pad) * E * 4       # tables
                        + weight_elems * 4                # weights/biases
                        + B_pad * 4),                     # output
    )

    out = pl.pallas_call(
        _ncf_kernel,
        out_shape=jax.ShapeDtypeStruct((1, B_pad), jnp.float32),
        grid_spec=grid_spec,
        compiler_params=pltpu.CompilerParams(
            dimension_semantics=("parallel",)),
        cost_estimate=cost,
    )(
        uid, iid,
        utab, itab,
        params["w1_user"], params["w1_item"], params["b1"],
        params["w2"], params["b2"],
        params["w3"], params["b3"],
    )

    result = out[0, :B]
    # PyTorch .squeeze(): (B, 1) -> (B,) for B > 1, 0-d for B == 1.
    if B == 1:
        return result[0]
    return result


def init_params(key, n_users, n_items, embed_dim=32):
    ks = jax.random.split(key, 9)
    scale = 0.1
    return {
        "user_embedding": scale * jax.random.normal(ks[0], (n_users, embed_dim), jnp.float32),
        "item_embedding": scale * jax.random.normal(ks[1], (n_items, embed_dim), jnp.float32),
        # Linear(2E -> 64): weight.T split into the user half and item half.
        "w1_user": scale * jax.random.normal(ks[2], (embed_dim, 64), jnp.float32),
        "w1_item": scale * jax.random.normal(ks[3], (embed_dim, 64), jnp.float32),
        "b1": scale * jax.random.normal(ks[4], (1, 64), jnp.float32),
        "w2": scale * jax.random.normal(ks[5], (64, 16), jnp.float32),   # (in, out)
        "b2": scale * jax.random.normal(ks[6], (1, 16), jnp.float32),
        "w3": scale * jax.random.normal(ks[7], (1, 16), jnp.float32),    # torch layout
        "b3": scale * jax.random.normal(ks[8], (1,), jnp.float32),
    }


if __name__ == "__main__":
    key = jax.random.PRNGKey(0)
    n_users, n_items, embed_dim, batch = 100, 200, 32, 8

    params = init_params(key, n_users, n_items, embed_dim)

    k_u, k_i = jax.random.split(jax.random.PRNGKey(1))
    user_ids = jax.random.randint(k_u, (batch,), 0, n_users, dtype=jnp.int32)
    item_ids = jax.random.randint(k_i, (batch,), 0, n_items, dtype=jnp.int32)

    out = ncf_forward(user_ids, item_ids, params)
    jax.block_until_ready(out)

    # Pure-JAX reference of the same forward pass.
    u = jnp.take(params["user_embedding"], user_ids, axis=0)
    it = jnp.take(params["item_embedding"], item_ids, axis=0)
    h1 = jnp.maximum(u @ params["w1_user"] + it @ params["w1_item"] + params["b1"], 0.0)
    h2 = jnp.maximum(h1 @ params["w2"] + params["b2"], 0.0)
    ref = (h2 @ params["w3"].T + params["b3"]).reshape(-1)

    assert out.shape == (batch,)
    assert jnp.allclose(out, ref, atol=1e-4, rtol=1e-4), (out, ref)

    print("KERNEL_OK")
</pallas_src>

<mosaic_0001>
module attributes {stable_mosaic.version = 11 : i64} {
  func.func @_ncf_kernel(%arg0: i32, %arg1: memref<128x1xi32, #tpu.memory_space<vmem>>, %arg2: memref<128x1xi32, #tpu.memory_space<vmem>>, %arg3: memref<128x32xf32, #tpu.memory_space<vmem>>, %arg4: memref<256x32xf32, #tpu.memory_space<vmem>>, %arg5: memref<32x64xf32, #tpu.memory_space<vmem>>, %arg6: memref<32x64xf32, #tpu.memory_space<vmem>>, %arg7: memref<1x64xf32, #tpu.memory_space<vmem>>, %arg8: memref<64x16xf32, #tpu.memory_space<vmem>>, %arg9: memref<1x16xf32, #tpu.memory_space<vmem>>, %arg10: memref<1x16xf32, #tpu.memory_space<vmem>>, %arg11: memref<1xf32, #tpu.memory_space<smem>>, %arg12: memref<1x128xf32, #tpu.memory_space<vmem>>) attributes {dimension_semantics = [#tpu.dimension_semantics<parallel>], iteration_bounds = array<i64: 1>, scalar_prefetch = 0 : i64, scratch_operands = 0 : i64, tpu.core_type = #tpu.core_type<tc>, window_params = [{transform_indices = @transform_0, window_bounds = array<i64: 128, 1>}, {transform_indices = @transform_1, window_bounds = array<i64: 128, 1>}, {pipeline_mode = #tpu.pipeline_mode<synchronous>, transform_indices = @transform_2, window_bounds = array<i64: 128, 32>}, {pipeline_mode = #tpu.pipeline_mode<synchronous>, transform_indices = @transform_3, window_bounds = array<i64: 256, 32>}, {pipeline_mode = #tpu.pipeline_mode<synchronous>, transform_indices = @transform_4, window_bounds = array<i64: 32, 64>}, {pipeline_mode = #tpu.pipeline_mode<synchronous>, transform_indices = @transform_5, window_bounds = array<i64: 32, 64>}, {pipeline_mode = #tpu.pipeline_mode<synchronous>, transform_indices = @transform_6, window_bounds = array<i64: 1, 64>}, {pipeline_mode = #tpu.pipeline_mode<synchronous>, transform_indices = @transform_7, window_bounds = array<i64: 64, 16>}, {pipeline_mode = #tpu.pipeline_mode<synchronous>, transform_indices = @transform_8, window_bounds = array<i64: 1, 16>}, {pipeline_mode = #tpu.pipeline_mode<synchronous>, transform_indices = @transform_9, window_bounds = array<i64: 1, 16>}, {transform_indices = @transform_10, window_bounds = array<i64: 1>}, {transform_indices = @transform_11, window_bounds = array<i64: 1, 128>}]} {
    %c0 = arith.constant 0 : index
    %c0_0 = arith.constant 0 : index
    %0 = vector.load %arg1[%c0, %c0_0] : memref<128x1xi32, #tpu.memory_space<vmem>>, vector<128x1xi32>
    %c0_1 = arith.constant 0 : index
    %c0_2 = arith.constant 0 : index
    %1 = vector.load %arg2[%c0_1, %c0_2] : memref<128x1xi32, #tpu.memory_space<vmem>>, vector<128x1xi32>
    %2 = tpu.iota {dimensions = array<i32: 1>} : vector<128x128xi32>
    %3 = vector.broadcast %0 : vector<128x1xi32> to vector<128x128xi32>
    %4 = arith.cmpi eq, %2, %3 : vector<128x128xi32>
    %5 = arith.extui %4 : vector<128x128xi1> to vector<128x128xi32>
    %6 = arith.sitofp %5 : vector<128x128xi32> to vector<128x128xf32>
    %7 = tpu.iota {dimensions = array<i32: 1>} : vector<128x256xi32>
    %8 = vector.broadcast %1 : vector<128x1xi32> to vector<128x256xi32>
    %9 = arith.cmpi eq, %7, %8 : vector<128x256xi32>
    %10 = arith.extui %9 : vector<128x256xi1> to vector<128x256xi32>
    %11 = arith.sitofp %10 : vector<128x256xi32> to vector<128x256xf32>
    %c0_3 = arith.constant 0 : index
    %c0_4 = arith.constant 0 : index
    %12 = vector.load %arg3[%c0_3, %c0_4] : memref<128x32xf32, #tpu.memory_space<vmem>>, vector<128x32xf32>
    %cst = arith.constant dense<0.000000e+00> : vector<128x32xf32>
    %13 = tpu.matmul %6, %12, %cst {dimension_numbers = #tpu.dot_dimension_numbers<[1], [0], [0], [1], [0, 0, 1, 1], [], []>} : vector<128x128xf32>, vector<128x32xf32>, vector<128x32xf32> -> vector<128x32xf32>
    %c0_5 = arith.constant 0 : index
    %c0_6 = arith.constant 0 : index
    %14 = vector.load %arg4[%c0_5, %c0_6] : memref<256x32xf32, #tpu.memory_space<vmem>>, vector<256x32xf32>
    %cst_7 = arith.constant dense<0.000000e+00> : vector<128x32xf32>
    %15 = tpu.matmul %11, %14, %cst_7 {dimension_numbers = #tpu.dot_dimension_numbers<[1], [0], [0], [1], [0, 0, 1, 1], [], []>} : vector<128x256xf32>, vector<256x32xf32>, vector<128x32xf32> -> vector<128x32xf32>
    %c0_8 = arith.constant 0 : index
    %c0_9 = arith.constant 0 : index
    %16 = vector.load %arg5[%c0_8, %c0_9] : memref<32x64xf32, #tpu.memory_space<vmem>>, vector<32x64xf32>
    %cst_10 = arith.constant dense<0.000000e+00> : vector<128x64xf32>
    %17 = tpu.matmul %13, %16, %cst_10 {dimension_numbers = #tpu.dot_dimension_numbers<[1], [0], [0], [1], [0, 0, 1, 1], [], []>} : vector<128x32xf32>, vector<32x64xf32>, vector<128x64xf32> -> vector<128x64xf32>
    %c0_11 = arith.constant 0 : index
    %c0_12 = arith.constant 0 : index
    %18 = vector.load %arg6[%c0_11, %c0_12] : memref<32x64xf32, #tpu.memory_space<vmem>>, vector<32x64xf32>
    %cst_13 = arith.constant dense<0.000000e+00> : vector<128x64xf32>
    %19 = tpu.matmul %15, %18, %cst_13 {dimension_numbers = #tpu.dot_dimension_numbers<[1], [0], [0], [1], [0, 0, 1, 1], [], []>} : vector<128x32xf32>, vector<32x64xf32>, vector<128x64xf32> -> vector<128x64xf32>
    %20 = arith.addf %17, %19 : vector<128x64xf32>
    %c0_14 = arith.constant 0 : index
    %c0_15 = arith.constant 0 : index
    %21 = vector.load %arg7[%c0_14, %c0_15] : memref<1x64xf32, #tpu.memory_space<vmem>>, vector<1x64xf32>
    %22 = vector.broadcast %21 : vector<1x64xf32> to vector<128x64xf32>
    %23 = arith.addf %20, %22 : vector<128x64xf32>
    %cst_16 = arith.constant 0.000000e+00 : f32
    %24 = vector.broadcast %cst_16 : f32 to vector<128x64xf32>
    %25 = arith.maximumf %23, %24 : vector<128x64xf32>
    %c0_17 = arith.constant 0 : index
    %c0_18 = arith.constant 0 : index
    %26 = vector.load %arg8[%c0_17, %c0_18] : memref<64x16xf32, #tpu.memory_space<vmem>>, vector<64x16xf32>
    %cst_19 = arith.constant dense<0.000000e+00> : vector<128x16xf32>
    %27 = tpu.matmul %25, %26, %cst_19 {dimension_numbers = #tpu.dot_dimension_numbers<[1], [0], [0], [1], [0, 0, 1, 1], [], []>} : vector<128x64xf32>, vector<64x16xf32>, vector<128x16xf32> -> vector<128x16xf32>
    %c0_20 = arith.constant 0 : index
    %c0_21 = arith.constant 0 : index
    %28 = vector.load %arg9[%c0_20, %c0_21] : memref<1x16xf32, #tpu.memory_space<vmem>>, vector<1x16xf32>
    %29 = vector.broadcast %28 : vector<1x16xf32> to vector<128x16xf32>
    %30 = arith.addf %27, %29 : vector<128x16xf32>
    %cst_22 = arith.constant 0.000000e+00 : f32
    %31 = vector.broadcast %cst_22 : f32 to vector<128x16xf32>
    %32 = arith.maximumf %30, %31 : vector<128x16xf32>
    %c0_23 = arith.constant 0 : index
    %c0_24 = arith.constant 0 : index
    %33 = vector.load %arg10[%c0_23, %c0_24] : memref<1x16xf32, #tpu.memory_space<vmem>>, vector<1x16xf32>
    %cst_25 = arith.constant dense<0.000000e+00> : vector<1x128xf32>
    %34 = tpu.matmul %33, %32, %cst_25 {dimension_numbers = #tpu.dot_dimension_numbers<[1], [1], [0], [0], [0, 0, 1, 0], [], []>} : vector<1x16xf32>, vector<128x16xf32>, vector<1x128xf32> -> vector<1x128xf32>
    %c0_26 = arith.constant 0 : index
    %35 = memref.load %arg11[%c0_26] : memref<1xf32, #tpu.memory_space<smem>>
    %36 = vector.broadcast %35 : f32 to vector<1x128xf32>
    %37 = arith.addf %34, %36 : vector<1x128xf32>
    %c0_27 = arith.constant 0 : index
    %c0_28 = arith.constant 0 : index
    %38 = vector.load %arg12[%c0_27, %c0_28] : memref<1x128xf32, #tpu.memory_space<vmem>>, vector<1x128xf32>
    tpu.vector_store %arg12[%c0_27, %c0_28], %37 {strides = array<i32>} : memref<1x128xf32, #tpu.memory_space<vmem>>, vector<1x128xf32>,
    return
  }
  func.func @transform_0(%arg0: i32) -> (i32, i32) {
    %c0_i32 = arith.constant 0 : i32
    %c0_i32_0 = arith.constant 0 : i32
    return %arg0, %c0_i32 : i32, i32
  }
  func.func @transform_1(%arg0: i32) -> (i32, i32) {
    %c0_i32 = arith.constant 0 : i32
    %c0_i32_0 = arith.constant 0 : i32
    return %arg0, %c0_i32 : i32, i32
  }
  func.func @transform_2(%arg0: i32) -> (i32, i32) {
    %c0_i32 = arith.constant 0 : i32
    %c0_i32_0 = arith.constant 0 : i32
    %c0_i32_1 = arith.constant 0 : i32
    return %c0_i32, %c0_i32_0 : i32, i32
  }
  func.func @transform_3(%arg0: i32) -> (i32, i32) {
    %c0_i32 = arith.constant 0 : i32
    %c0_i32_0 = arith.constant 0 : i32
    %c0_i32_1 = arith.constant 0 : i32
    return %c0_i32, %c0_i32_0 : i32, i32
  }
  func.func @transform_4(%arg0: i32) -> (i32, i32) {
    %c0_i32 = arith.constant 0 : i32
    %c0_i32_0 = arith.constant 0 : i32
    %c0_i32_1 = arith.constant 0 : i32
    return %c0_i32, %c0_i32_0 : i32, i32
  }
  func.func @transform_5(%arg0: i32) -> (i32, i32) {
    %c0_i32 = arith.constant 0 : i32
    %c0_i32_0 = arith.constant 0 : i32
    %c0_i32_1 = arith.constant 0 : i32
    return %c0_i32, %c0_i32_0 : i32, i32
  }
  func.func @transform_6(%arg0: i32) -> (i32, i32) {
    %c0_i32 = arith.constant 0 : i32
    %c0_i32_0 = arith.constant 0 : i32
    %c0_i32_1 = arith.constant 0 : i32
    return %c0_i32, %c0_i32_0 : i32, i32
  }
  func.func @transform_7(%arg0: i32) -> (i32, i32) {
    %c0_i32 = arith.constant 0 : i32
    %c0_i32_0 = arith.constant 0 : i32
    %c0_i32_1 = arith.constant 0 : i32
    return %c0_i32, %c0_i32_0 : i32, i32
  }
  func.func @transform_8(%arg0: i32) -> (i32, i32) {
    %c0_i32 = arith.constant 0 : i32
    %c0_i32_0 = arith.constant 0 : i32
    %c0_i32_1 = arith.constant 0 : i32
    return %c0_i32, %c0_i32_0 : i32, i32
  }
  func.func @transform_9(%arg0: i32) -> (i32, i32) {
    %c0_i32 = arith.constant 0 : i32
    %c0_i32_0 = arith.constant 0 : i32
    %c0_i32_1 = arith.constant 0 : i32
    return %c0_i32, %c0_i32_0 : i32, i32
  }
  func.func @transform_10(%arg0: i32) -> i32 {
    %c0_i32 = arith.constant 0 : i32
    %c0_i32_0 = arith.constant 0 : i32
    return %c0_i32 : i32
  }
  func.func @transform_11(%arg0: i32) -> (i32, i32) {
    %c0_i32 = arith.constant 0 : i32
    %c0_i32_0 = arith.constant 0 : i32
    return %c0_i32, %arg0 : i32, i32
  }
}

</mosaic_0001>

<bundles_post_ra>
// kernel: ncf_forward.1
= control target key start
LH: loop header
LB: loop body
LE: loop exit
PB: predicated region body
PF: predicated region fallthrough
CT: control target
= control target key end

     0   :  { %v2147_v0 = vmov 0   ;;  %s2717_s1 = inlined_call_operand.vmem [shape: s32[128,1], index: 1, kind: input, shape index: {}]   ;;  %s2718_s3 = inlined_call_operand.vmem [shape: f32[256,32], index: 3, kind: input, shape index: {}]   ;;  %s2719_s0 = inlined_call_operand.vmem [shape: s32[128,1], index: 0, kind: input, shape index: {}]   ;;  %s2720_s2 = inlined_call_operand.vmem [shape: f32[128,32], index: 2, kind: input, shape index: {}]   ;;  %s2721_s5 = inlined_call_operand.vmem [shape: f32[32,64], index: 5, kind: input, shape index: {}]   ;;  %s2722_s4 = inlined_call_operand.vmem [shape: f32[32,64], index: 4, kind: input, shape index: {}]   ;;  %s2723_s7 = inlined_call_operand.vmem [shape: f32[64,16], index: 7, kind: input, shape index: {}]   ;;  %s2724_s6 = inlined_call_operand.vmem [shape: f32[1,64], index: 6, kind: input, shape index: {}]   ;;  %s2725_s8 = inlined_call_operand.vmem [shape: f32[1,16], index: 8, kind: input, shape index: {}]   ;;  %s2726_s9 = inlined_call_operand.vmem [shape: f32[1,16], index: 9, kind: input, shape index: {}]   ;;  %s2727_s10 = inlined_call_operand.<no memory space> [shape: f32[1], index: 10, kind: input, shape index: {}]   ;;  %s2728_s11 = inlined_call_operand.vmem [shape: f32[1,128], index: 11, kind: output, shape index: {}]  }
   0x1   :  { %2146 = vset.pattern.permute.xlu1 %v2147_v0  ;;  %2145 = vset.pattern.permute.xlu0 %v2147_v0  ;;  %v57_v1 = vld [vmem:[%s2717_s1 + $0x10] sm:$0xff]  ;;  %v55_v2 = vld [vmem:[%s2717_s1] sm:$0xff]  ;;  %v58_v3 = vld [vmem:[%s2717_s1 + $0x18] sm:$0xff] }
   0x2   :  { %177 = vperm.xlu1 %2146, %v57_v1   ;;  %171 = vperm.xlu0 %2145, %v55_v2   ;;  %v56_v4 = vld [vmem:[%s2717_s1 + $0x8] sm:$0xff]  ;;  %v59_v6 = vld [vmem:[%s2717_s1 + $0x20] sm:$0xff]  ;;  %v62_v7 = vld [vmem:[%s2717_s1 + $0x38] sm:$0xff] }
   0x3   :  { %v60_v5 = vld [vmem:[%s2717_s1 + $0x28] sm:$0xff]  ;;  %v61_v8 = vld [vmem:[%s2717_s1 + $0x30] sm:$0xff]  ;;  %v491_v9 = vld [vmem:[%s2718_s3 + $0x80] sm:$0xff] }
   0x4   :  { %v492_v10 = vld [vmem:[%s2718_s3 + $0x88] sm:$0xff]  ;;  %v475_v11 = vld [vmem:[%s2718_s3] sm:$0xff]  ;;  %v493_v15 = vld [vmem:[%s2718_s3 + $0x90] sm:$0xff] }
   0x5   :  { %v476_v12 = vld [vmem:[%s2718_s3 + $0x8] sm:$0xff]  ;;  %v2024_v13 = vpack.c.bf16 %v492_v10, %v491_v9  ;;  %v494_v16 = vld [vmem:[%s2718_s3 + $0x98] sm:$0xff]  ;;  %v477_v17 = vld [vmem:[%s2718_s3 + $0x10] sm:$0xff] }
   0x6   :  { %180 = vperm.xlu1 %2146, %v58_v3   ;;  %174 = vperm.xlu0 %2145, %v56_v4   ;;  %v2026_v14 = vpack.c.bf16 %v476_v12, %v475_v11  ;;  %v2028_v18 = vpack.c.bf16 %v494_v16, %v493_v15  ;;  %v478_v19 = vld [vmem:[%s2718_s3 + $0x18] sm:$0xff]  ;;  %v495_v20 = vld [vmem:[%s2718_s3 + $0xa0] sm:$0xff]  ;;  %v496_v21 = vld [vmem:[%s2718_s3 + $0xa8] sm:$0xff] }
   0x7   :  { %v40_v22 = vld [vmem:[%s2719_s0 + $0x8] sm:$0xff]  ;;  %v39_v23 = vld [vmem:[%s2719_s0] sm:$0xff]  ;;  %2025 = vmatprep.subr.bf16.mxu1 %v2024_v13  ;;  %v2030_v24 = vpack.c.bf16 %v478_v19, %v477_v17  ;;  %v2032_v26 = vpack.c.bf16 %v496_v21, %v495_v20  ;;  %v42_v30 = vld [vmem:[%s2719_s0 + $0x18] sm:$0xff] }
   0x8   :  { %2027 = vmatpush3.bf16.msra.mxu1 %v2026_v14  ;;  %v479_v25 = vld [vmem:[%s2718_s3 + $0x20] sm:$0xff]  ;;  %v480_v27 = vld [vmem:[%s2718_s3 + $0x28] sm:$0xff]  ;;  %v497_v31 = vld [vmem:[%s2718_s3 + $0xb0] sm:$0xff] }
   0x9   :  { %2029 = vmatprep.subr.bf16.mxu1 %v2028_v18  ;;  %v314_v28 = vld [vmem:[%s2720_s2] sm:$0xff]  ;;  %v315_v29 = vld [vmem:[%s2720_s2 + $0x8] sm:$0xff]  ;;  %v498_v32 = vld [vmem:[%s2718_s3 + $0xb8] sm:$0xff]  ;;  %v2034_v37 = vpack.c.bf16 %v480_v27, %v479_v25 }
   0xa   :  { %186 = vperm.xlu1 %2146, %v60_v5   ;;  %183 = vperm.xlu0 %2145, %v59_v6   ;;  %v1992_v33 = vpack.c.bf16 %v315_v29, %v314_v28  ;;  %v41_v34 = vld [vmem:[%s2719_s0 + $0x10] sm:$0xff]  ;;  %v317_v36 = vld [vmem:[%s2720_s2 + $0x18] sm:$0xff]  ;;  %v2036_v40 = vpack.c.bf16 %v498_v32, %v497_v31  ;;  %v318_v42 = vld [vmem:[%s2720_s2 + $0x20] sm:$0xff] }
   0xb   :  { %v316_v35 = vld [vmem:[%s2720_s2 + $0x10] sm:$0xff]  ;;  %v482_v41 = vld [vmem:[%s2718_s3 + $0x38] sm:$0xff]  ;;  %v319_v43 = vld [vmem:[%s2720_s2 + $0x28] sm:$0xff] }
   0xc   :  { %2031 = vmatpush3.bf16.msra.mxu1 %v2030_v24  ;;  %v481_v38 = vld [vmem:[%s2718_s3 + $0x30] sm:$0xff]  ;;  %1993 = vmatprep.subr.bf16.mxu0 %v1992_v33  ;;  %v1996_v39 = vpack.c.bf16 %v317_v36, %v316_v35  ;;  %v499_v44 = vld [vmem:[%s2718_s3 + $0xc0] sm:$0xff]  ;;  %v500_v45 = vld [vmem:[%s2718_s3 + $0xc8] sm:$0xff]  ;;  %v2000_v48 = vpack.c.bf16 %v319_v43, %v318_v42 }
   0xd   :  { %2033 = vmatprep.subr.bf16.mxu1 %v2032_v26  ;;  %1995 = vmatpush3.bf16.msra.mxu0 %v1992_v33  ;;  %v44_v46 = vld [vmem:[%s2719_s0 + $0x28] sm:$0xff]  ;;  %v43_v47 = vld [vmem:[%s2719_s0 + $0x20] sm:$0xff]  ;;  %v2038_v49 = vpack.c.bf16 %v482_v41, %v481_v38  ;;  %v320_v50 = vld [vmem:[%s2720_s2 + $0x30] sm:$0xff]  ;;  %v2040_v52 = vpack.c.bf16 %v500_v45, %v499_v44  ;;  %v71_v44 = vlaneseq }
   0xe   :  { %192 = vperm.xlu1 %2146, %v62_v7   ;;  %189 = vperm.xlu0 %2145, %v61_v8   ;;  %v321_v51 = vld [vmem:[%s2720_s2 + $0x38] sm:$0xff]  ;;  %v483_v53 = vld [vmem:[%s2718_s3 + $0x40] sm:$0xff]  ;;  %v484_v54 = vld [vmem:[%s2718_s3 + $0x48] sm:$0xff] }
   0xf   :  { %1997 = vmatprep.subr.bf16.mxu0 %v1996_v39  ;;  %v501_v55 = vld [vmem:[%s2718_s3 + $0xd0] sm:$0xff]  ;;  %v502_v56 = vld [vmem:[%s2718_s3 + $0xd8] sm:$0xff]  ;;  %v2004_v59 = vpack.c.bf16 %v321_v51, %v320_v50  ;;  %v2042_v60 = vpack.c.bf16 %v484_v54, %v483_v53  ;;  %v322_v61 = vld [vmem:[%s2720_s2 + $0x40] sm:$0xff]  ;;  %v2458_v45 = vand.u32 127, %v71_v44 }
  0x10   :  { %2035 = vmatpush3.bf16.msra.mxu1 %v2034_v37  ;;  %v46_v57 = vld [vmem:[%s2719_s0 + $0x38] sm:$0xff]  ;;  %v45_v58 = vld [vmem:[%s2719_s0 + $0x30] sm:$0xff]  ;;  %v323_v62 = vld [vmem:[%s2720_s2 + $0x48] sm:$0xff]  ;;  %v2044_v63 = vpack.c.bf16 %v502_v56, %v501_v55 }
  0x11   :  { %2037 = vmatprep.subr.bf16.mxu1 %v2036_v40  ;;  %1999 = vmatpush3.bf16.msra.mxu0 %v1996_v39  ;;  %v485_v0 = vld [vmem:[%s2718_s3 + $0x50] sm:$0xff]  ;;  %v486_v1 = vld [vmem:[%s2718_s3 + $0x58] sm:$0xff]  ;;  %v503_v2 = vld [vmem:[%s2718_s3 + $0xe0] sm:$0xff]  ;;  %v2008_v6 = vpack.c.bf16 %v323_v62, %v322_v61 }
  0x12   :  { %77 = vperm.xlu1 %2146, %v40_v22   ;;  %74 = vperm.xlu0 %2145, %v39_v23   ;;  %v504_v3 = vld [vmem:[%s2718_s3 + $0xe8] sm:$0xff]  ;;  %v63_v5 = vld [vmem:[%s2717_s1 + $0x40] sm:$0xff]  ;;  %v2046_v7 = vpack.c.bf16 %v486_v1, %v485_v0  ;;  %v324_v8 = vld [vmem:[%s2720_s2 + $0x50] sm:$0xff] }
  0x13   :  { %2001 = vmatprep.subr.bf16.mxu0 %v2000_v48  ;;  %v64_v4 = vld [vmem:[%s2717_s1 + $0x48] sm:$0xff]  ;;  %v325_v9 = vld [vmem:[%s2720_s2 + $0x58] sm:$0xff]  ;;  %v2048_v10 = vpack.c.bf16 %v504_v3, %v503_v2  ;;  %v487_v11 = vld [vmem:[%s2718_s3 + $0x60] sm:$0xff] }
  0x14   :  { %2039 = vmatpush3.bf16.msra.mxu1 %v2038_v49  ;;  %v488_v12 = vld [vmem:[%s2718_s3 + $0x68] sm:$0xff]  ;;  %v505_v13 = vld [vmem:[%s2718_s3 + $0xf0] sm:$0xff]  ;;  %v506_v14 = vld [vmem:[%s2718_s3 + $0xf8] sm:$0xff]  ;;  %v2012_v17 = vpack.c.bf16 %v325_v9, %v324_v8  ;;  %v2148_v49 = vmov 1.0  }
  0x15   :  { %2041 = vmatprep.subr.bf16.mxu1 %v2040_v52  ;;  %2003 = vmatpush3.bf16.msra.mxu0 %v2000_v48  ;;  %v48_v15 = vld [vmem:[%s2719_s0 + $0x48] sm:$0xff]  ;;  %v47_v16 = vld [vmem:[%s2719_s0 + $0x40] sm:$0xff]  ;;  %v2050_v18 = vpack.c.bf16 %v488_v12, %v487_v11  ;;  %v2052_v21 = vpack.c.bf16 %v506_v14, %v505_v13  ;;  %v489_v22 = vld [vmem:[%s2718_s3 + $0x70] sm:$0xff] }
  0x16   :  { %83 = vperm.xlu1 %2146, %v42_v30   ;;  %80 = vperm.xlu0 %2145, %v41_v34   ;;  %v326_v19 = vld [vmem:[%s2720_s2 + $0x60] sm:$0xff]  ;;  %v327_v20 = vld [vmem:[%s2720_s2 + $0x68] sm:$0xff]  ;;  %v490_v23 = vld [vmem:[%s2718_s3 + $0x78] sm:$0xff] }
  0x17   :  { %2005 = vmatprep.subr.bf16.mxu0 %v2004_v59  ;;  %v66_v24 = vld [vmem:[%s2717_s1 + $0x58] sm:$0xff]  ;;  %v65_v25 = vld [vmem:[%s2717_s1 + $0x50] sm:$0xff]  ;;  %v2016_v26 = vpack.c.bf16 %v327_v20, %v326_v19  ;;  %v2054_v27 = vpack.c.bf16 %v490_v23, %v489_v22  ;;  %v68_v33 = vld [vmem:[%s2717_s1 + $0x68] sm:$0xff] }
  0x18   :  { %2043 = vmatpush3.bf16.msra.mxu1 %v2042_v60  ;;  %v328_v28 = vld [vmem:[%s2720_s2 + $0x70] sm:$0xff]  ;;  %v329_v29 = vld [vmem:[%s2720_s2 + $0x78] sm:$0xff]  ;;  %v67_v34 = vld [vmem:[%s2717_s1 + $0x60] sm:$0xff] }
  0x19   :  { %2045 = vmatprep.subr.bf16.mxu1 %v2044_v63  ;;  %2007 = vmatpush3.bf16.msra.mxu0 %v2004_v59  ;;  %v50_v30 = vld [vmem:[%s2719_s0 + $0x58] sm:$0xff]  ;;  %v49_v31 = vld [vmem:[%s2719_s0 + $0x50] sm:$0xff]  ;;  %v2020_v32 = vpack.c.bf16 %v329_v29, %v328_v28  ;;  %v52_v35 = vld [vmem:[%s2719_s0 + $0x68] sm:$0xff] }
  0x1a   :  { %89 = vperm.xlu1 %2146, %v44_v46   ;;  %86 = vperm.xlu0 %2145, %v43_v47   ;;  %v51_v36 = vld [vmem:[%s2719_s0 + $0x60] sm:$0xff]  ;;  %v70_v37 = vld [vmem:[%s2717_s1 + $0x78] sm:$0xff]  ;;  %v69_v38 = vld [vmem:[%s2717_s1 + $0x70] sm:$0xff]  ;;  %v2461_v46 = vadd.s32 128, %v2458_v45 }
  0x1b   :  { %2009 = vmatprep.subr.bf16.mxu0 %v2008_v6  ;;  %v54_v39 = vld [vmem:[%s2719_s0 + $0x78] sm:$0xff]  ;;  %v53_v40 = vld [vmem:[%s2719_s0 + $0x70] sm:$0xff]  ;;  %v656_v41 = vld [vmem:[%s2721_s5] sm:$0xff] }
  0x1c   :  { %2047 = vmatpush3.bf16.msra.mxu1 %v2046_v7  ;;  %v657_v42 = vld [vmem:[%s2721_s5 + $0x8] sm:$0xff]  ;;  %v652_v19 = vld [vmem:[%s2722_s4] sm:$0xff]  ;;  %v654_v28 = vld [vmem:[%s2722_s4 + $0x10] sm:$0xff] }
  0x1d   :  { %2049 = vmatprep.subr.bf16.mxu1 %v2048_v10  ;;  %2011 = vmatpush3.bf16.msra.mxu0 %v2008_v6  ;;  %v2056_v43 = vpack.c.bf16 %v657_v42, %v656_v41  ;;  %v653_v20 = vld [vmem:[%s2722_s4 + $0x8] sm:$0xff]  ;;  %v1086_v22 = vld [vmem:[%s2723_s7] sm:$0xff]  ;;  %v655_v29 = vld [vmem:[%s2722_s4 + $0x18] sm:$0xff] }
  0x1e   :  { %95 = vperm.xlu1 %2146, %v46_v57   ;;  %92 = vperm.xlu0 %2145, %v45_v58   ;;  %v1087_v23 = vld [vmem:[%s2723_s7 + $0x8] sm:$0xff] }
  0x1f   :  { %2013 = vmatprep.subr.bf16.mxu0 %v2012_v17 }
  0x20   :  { %2051 = vmatpush3.bf16.msra.mxu1 %v2050_v18 }
  0x21   :  { %2053 = vmatprep.subr.bf16.mxu1 %v2052_v21  ;;  %2015 = vmatpush3.bf16.msra.mxu0 %v2012_v17  ;;  %v659_v17 = vld [vmem:[%s2721_s5 + $0x18] sm:$0xff]  ;;  %v2064_v21 = vpack.c.bf16 %v653_v20, %v652_v19 }
  0x22   :  { %198 = vperm.xlu1 %2146, %v64_v4   ;;  %195 = vperm.xlu0 %2145, %v63_v5  }
  0x23   :  { %2017 = vmatprep.subr.bf16.mxu0 %v2016_v26 }
  0x24   :  { %2055 = vmatpush3.bf16.msra.mxu1 %v2054_v27 }
  0x25   :  { %2019 = vmatpush3.bf16.msra.mxu0 %v2016_v26  ;;  %2120 = vmatprep.subr.bf16.mxu1 %v2056_v43 }
  0x26   :  { %101 = vperm.xlu1 %2146, %v48_v15   ;;  %98 = vperm.xlu0 %2145, %v47_v16   ;;  %v658_v16 = vld [vmem:[%s2721_s5 + $0x10] sm:$0xff] }
  0x27   :  { %2021 = vmatprep.subr.bf16.mxu0 %v2020_v32  ;;  %v2060_v18 = vpack.c.bf16 %v659_v17, %v658_v16 }
  0x29   :  { %2023 = vmatpush3.bf16.msra.mxu0 %v2020_v32 }
  0x2a   :  { %204 = vperm.xlu1 %2146, %v66_v24   ;;  %201 = vperm.xlu0 %2145, %v65_v25   ;;  %v2577_v24 = vpack.c.bf16 %v1087_v23, %v1086_v22 }
  0x2b   :  { %2057 = vmatprep.subr.bf16.mxu0 %v2056_v43 }
  0x2e   :  { %107 = vperm.xlu1 %2146, %v50_v30   ;;  %104 = vperm.xlu0 %2145, %v49_v31  }
  0x32   :  { %210 = vperm.xlu1 %2146, %v68_v33   ;;  %207 = vperm.xlu0 %2145, %v67_v34   ;;  %v2068_v33 = vpack.c.bf16 %v655_v29, %v654_v28 }
  0x36   :  { %113 = vperm.xlu1 %2146, %v52_v35   ;;  %110 = vperm.xlu0 %2145, %v51_v36  }
  0x3a   :  { %216 = vperm.xlu1 %2146, %v70_v37   ;;  %213 = vperm.xlu0 %2145, %v69_v38  }
  0x3e   :  { %119 = vperm.xlu1 %2146, %v54_v39   ;;  %116 = vperm.xlu0 %2145, %v53_v40  }
  0x81   :  { %v178_v47 = vpop.permute.xlu1 %177  ;;  %v172_v48 = vpop.permute.xlu0 %171 }
  0x82   :  { %vm218_vm0 = vcmp.eq.s32.totalorder %v2458_v45, %v172_v48  ;;  %vm219_vm1 = vcmp.eq.s32.totalorder %v2461_v46, %v172_v48  ;;  %vm223_vm2 = vcmp.eq.s32.totalorder %v2461_v46, %v178_v47  ;;  %vm222_vm5 = vcmp.eq.s32.totalorder %v2458_v45, %v178_v47 }
  0x83   :  { %1505 = vmatprep.mubr.msk.f32.mxu1 %vm219_vm1, %v2148_v49 }
  0x84   :  { %1506 = vmatmul.mubr.msk.f32.vlgmr.msra.gmra.mrb[0].mxu1 %vm218_vm0, %v2148_v49 }
  0x85   :  { %v181_v50 = vpop.permute.xlu1 %180  ;;  %v175_v51 = vpop.permute.xlu0 %174  ;;  %2122 = vmatpush3.bf16.msra.mxu1 %v2056_v43 }
  0x86   :  { %vm220_vm3 = vcmp.eq.s32.totalorder %v2458_v45, %v175_v51  ;;  %vm221_vm4 = vcmp.eq.s32.totalorder %v2461_v46, %v175_v51  ;;  %vm225_vm6 = vcmp.eq.s32.totalorder %v2461_v46, %v181_v50  ;;  %vm224_vm7 = vcmp.eq.s32.totalorder %v2458_v45, %v181_v50  ;;  %2121 = vmatprep.subr.bf16.mxu1 %v2060_v18 }
  0x87   :  { %1507 = vmatprep.mubr.msk.f32.mxu1 %vm221_vm4, %v2148_v49 }
  0x88   :  { %1508 = vmatmul.mubr.msk.f32.gmra.mrb[2].mxu1 %vm220_vm3, %v2148_v49 }
  0x89   :  { %v187_v52 = vpop.permute.xlu1 %186  ;;  %v184_v53 = vpop.permute.xlu0 %183  ;;  %1509 = vmatprep.mubr.msk.f32.mxu1 %vm223_vm2, %v2148_v49  ;;  %2123 = vmatpush3.bf16.msra.mxu1 %v2060_v18 }
  0x8a   :  { %vm227_vm8 = vcmp.eq.s32.totalorder %v2461_v46, %v184_v53  ;;  %vm226_vm11 = vcmp.eq.s32.totalorder %v2458_v45, %v184_v53  ;;  %vm229_vm12 = vcmp.eq.s32.totalorder %v2461_v46, %v187_v52  ;;  %vm228_vm15 = vcmp.eq.s32.totalorder %v2458_v45, %v187_v52  ;;  %2073 = vmatprep.subr.bf16.mxu1 %v2577_v24 }
  0x8c   :  { %1510 = vmatmul.mubr.msk.f32.gmra.mrb[4].mxu1 %vm222_vm5, %v2148_v49 }
  0x8d   :  { %v193_v54 = vpop.permute.xlu1 %192  ;;  %1511 = vmatprep.mubr.msk.f32.mxu1 %vm225_vm6, %v2148_v49  ;;  %v190_v55 = vpop.permute.xlu0 %189 }
  0x8e   :  { %vm231_vm0 = vcmp.eq.s32.totalorder %v2461_v46, %v190_v55  ;;  %vm230_vm3 = vcmp.eq.s32.totalorder %v2458_v45, %v190_v55  ;;  %vm233_vm4 = vcmp.eq.s32.totalorder %v2461_v46, %v193_v54 }
  0x90   :  { %1512 = vmatmul.mubr.msk.f32.gmra.mrb[6].mxu1 %vm224_vm7, %v2148_v49  ;;  %vm232_vm7 = vcmp.eq.s32.totalorder %v2458_v45, %v193_v54 }
  0x91   :  { %1513 = vmatprep.mubr.msk.f32.mxu1 %vm227_vm8, %v2148_v49  ;;  %v78_v56 = vpop.permute.xlu1 %77  ;;  %v75_v57 = vpop.permute.xlu0 %74 }
  0x92   :  { %vm122_vm9 = vcmp.eq.s32.totalorder %v2458_v45, %v78_v56  ;;  %vm121_vm10 = vcmp.eq.s32.totalorder %v2458_v45, %v75_v57 }
  0x93   :  { %1829 = vmatprep.mubr.msk.f32.mxu0 %vm121_vm10, %v2148_v49 }
  0x94   :  { %1830 = vmatmul.mubr.msk.f32.vlgmr.msra.gmra.mrb[0].mxu0 %vm122_vm9, %v2148_v49  ;;  %1514 = vmatmul.mubr.msk.f32.gmra.mrb[8].mxu1 %vm226_vm11, %v2148_v49 }
  0x95   :  { %1515 = vmatprep.mubr.msk.f32.mxu1 %vm229_vm12, %v2148_v49  ;;  %v84_v58 = vpop.permute.xlu1 %83  ;;  %v81_v59 = vpop.permute.xlu0 %80  ;;  %2059 = vmatpush3.bf16.msra.mxu0 %v2056_v43 }
  0x96   :  { %vm124_vm13 = vcmp.eq.s32.totalorder %v2458_v45, %v84_v58  ;;  %vm123_vm14 = vcmp.eq.s32.totalorder %v2458_v45, %v81_v59  ;;  %2061 = vmatprep.subr.bf16.mxu0 %v2060_v18 }
  0x97   :  { %1832 = vmatprep.mubr.msk.f32.mxu0 %vm123_vm14, %v2148_v49 }
  0x98   :  { %1833 = vmatmul.mubr.msk.f32.gmra.mrb[2].mxu0 %vm124_vm13, %v2148_v49  ;;  %1516 = vmatmul.mubr.msk.f32.gmra.mrb[10].mxu1 %vm228_vm15, %v2148_v49 }
  0x99   :  { %1517 = vmatprep.mubr.msk.f32.mxu1 %vm231_vm0, %v2148_v49  ;;  %v90_v60 = vpop.permute.xlu1 %89  ;;  %v87_v61 = vpop.permute.xlu0 %86  ;;  %2063 = vmatpush3.bf16.msra.mxu0 %v2060_v18 }
  0x9a   :  { %vm126_vm1 = vcmp.eq.s32.totalorder %v2458_v45, %v90_v60  ;;  %vm125_vm2 = vcmp.eq.s32.totalorder %v2458_v45, %v87_v61  ;;  %2065 = vmatprep.subr.bf16.mxu0 %v2064_v21 }
  0x9b   :  { %1835 = vmatprep.mubr.msk.f32.mxu0 %vm125_vm2, %v2148_v49 }
  0x9c   :  { %1836 = vmatmul.mubr.msk.f32.gmra.mrb[4].mxu0 %vm126_vm1, %v2148_v49  ;;  %1518 = vmatmul.mubr.msk.f32.gmra.mrb[12].mxu1 %vm230_vm3, %v2148_v49 }
  0x9d   :  { %1519 = vmatprep.mubr.msk.f32.mxu1 %vm233_vm4, %v2148_v49  ;;  %v96_v62 = vpop.permute.xlu1 %95  ;;  %v93_v63 = vpop.permute.xlu0 %92 }
  0x9e   :  { %vm128_vm5 = vcmp.eq.s32.totalorder %v2458_v45, %v96_v62  ;;  %vm127_vm6 = vcmp.eq.s32.totalorder %v2458_v45, %v93_v63  ;;  %v1088_v63 = vld [vmem:[%s2723_s7 + $0x10] sm:$0xff] }
  0x9f   :  { %1838 = vmatprep.mubr.msk.f32.mxu0 %vm127_vm6, %v2148_v49 }
  0xa0   :  { %1839 = vmatmul.mubr.msk.f32.gmra.mrb[6].mxu0 %vm128_vm5, %v2148_v49  ;;  %1520 = vmatmul.mubr.msk.f32.gmra.mrb[14].mxu1 %vm232_vm7, %v2148_v49 }
  0xa1   :  { %v199_v0 = vpop.permute.xlu1 %198  ;;  %v196_v1 = vpop.permute.xlu0 %195 }
  0xa2   :  { %vm234_vm8 = vcmp.eq.s32.totalorder %v2458_v45, %v196_v1  ;;  %vm235_vm9 = vcmp.eq.s32.totalorder %v2461_v46, %v196_v1  ;;  %vm237_vm10 = vcmp.eq.s32.totalorder %v2461_v46, %v199_v0  ;;  %vm236_vm13 = vcmp.eq.s32.totalorder %v2458_v45, %v199_v0  ;;  %v1089_v0 = vld [vmem:[%s2723_s7 + $0x18] sm:$0xff] }
  0xa3   :  { %1521 = vmatprep.mubr.msk.f32.mxu1 %vm235_vm9, %v2148_v49 }
  0xa4   :  { %1522 = vmatmul.mubr.msk.f32.gmra.mrb[16].mxu1 %vm234_vm8, %v2148_v49 }
  0xa5   :  { %v102_v2 = vpop.permute.xlu1 %101  ;;  %1523 = vmatprep.mubr.msk.f32.mxu1 %vm237_vm10, %v2148_v49  ;;  %v99_v3 = vpop.permute.xlu0 %98 }
  0xa6   :  { %vm130_vm11 = vcmp.eq.s32.totalorder %v2458_v45, %v102_v2  ;;  %vm129_vm12 = vcmp.eq.s32.totalorder %v2458_v45, %v99_v3 }
  0xa7   :  { %1841 = vmatprep.mubr.msk.f32.mxu0 %vm129_vm12, %v2148_v49 }
  0xa8   :  { %1842 = vmatmul.mubr.msk.f32.gmra.mrb[8].mxu0 %vm130_vm11, %v2148_v49  ;;  %1524 = vmatmul.mubr.msk.f32.gmra.mrb[18].mxu1 %vm236_vm13, %v2148_v49 }
  0xa9   :  { %v205_v4 = vpop.permute.xlu1 %204  ;;  %v202_v5 = vpop.permute.xlu0 %201 }
  0xaa   :  { %vm238_vm14 = vcmp.eq.s32.totalorder %v2458_v45, %v202_v5  ;;  %vm239_vm15 = vcmp.eq.s32.totalorder %v2461_v46, %v202_v5  ;;  %vm241_vm0 = vcmp.eq.s32.totalorder %v2461_v46, %v205_v4  ;;  %vm240_vm3 = vcmp.eq.s32.totalorder %v2458_v45, %v205_v4 }
  0xab   :  { %1525 = vmatprep.mubr.msk.f32.mxu1 %vm239_vm15, %v2148_v49 }
  0xac   :  { %1526 = vmatmul.mubr.msk.f32.gmra.mrb[20].mxu1 %vm238_vm14, %v2148_v49 }
  0xad   :  { %v108_v6 = vpop.permute.xlu1 %107  ;;  %1527 = vmatprep.mubr.msk.f32.mxu1 %vm241_vm0, %v2148_v49  ;;  %v105_v7 = vpop.permute.xlu0 %104  ;;  %vm660_vm0 = vcmask 261120  }
  0xae   :  { %vm132_vm1 = vcmp.eq.s32.totalorder %v2458_v45, %v108_v6  ;;  %vm131_vm2 = vcmp.eq.s32.totalorder %v2458_v45, %v105_v7  ;;  %v2076_v6 = vpack.c.bf16 %v1089_v0, %v1088_v63  ;;  %v1090_v7 = vld [vmem:[%s2723_s7 + $0x20] sm:$0xff] }
  0xaf   :  { %1844 = vmatprep.mubr.msk.f32.mxu0 %vm131_vm2, %v2148_v49  ;;  %vm2150_vm2 = vmmov 0  }
  0xb0   :  { %1845 = vmatmul.mubr.msk.f32.gmra.mrb[10].mxu0 %vm132_vm1, %v2148_v49  ;;  %1528 = vmatmul.mubr.msk.f32.gmra.mrb[22].mxu1 %vm240_vm3, %v2148_v49  ;;  %vm1101_vm1 = vcmask 523264   ;;  %vm1314_vm3 = vcmask 130048  }
  0xb1   :  { %v211_v8 = vpop.permute.xlu1 %210  ;;  %v208_v9 = vpop.permute.xlu0 %207 }
  0xb2   :  { %vm242_vm4 = vcmp.eq.s32.totalorder %v2458_v45, %v208_v9  ;;  %vm243_vm5 = vcmp.eq.s32.totalorder %v2461_v46, %v208_v9  ;;  %vm245_vm6 = vcmp.eq.s32.totalorder %v2461_v46, %v211_v8  ;;  %vm244_vm9 = vcmp.eq.s32.totalorder %v2458_v45, %v211_v8  ;;  %v1091_v8 = vld [vmem:[%s2723_s7 + $0x28] sm:$0xff] }
  0xb3   :  { %1529 = vmatprep.mubr.msk.f32.mxu1 %vm243_vm5, %v2148_v49 }
  0xb4   :  { %1530 = vmatmul.mubr.msk.f32.gmra.mrb[24].mxu1 %vm242_vm4, %v2148_v49  ;;  %vm2680_vm4 = vmpackc.low %vm1314_vm3, %vm1314_vm3 }
  0xb5   :  { %v114_v10 = vpop.permute.xlu1 %113  ;;  %1531 = vmatprep.mubr.msk.f32.mxu1 %vm245_vm6, %v2148_v49  ;;  %v111_v11 = vpop.permute.xlu0 %110 }
  0xb6   :  { %vm134_vm7 = vcmp.eq.s32.totalorder %v2458_v45, %v114_v10  ;;  %vm133_vm8 = vcmp.eq.s32.totalorder %v2458_v45, %v111_v11 }
  0xb7   :  { %1847 = vmatprep.mubr.msk.f32.mxu0 %vm133_vm8, %v2148_v49 }
  0xb8   :  { %1848 = vmatmul.mubr.msk.f32.gmra.mrb[12].mxu0 %vm134_vm7, %v2148_v49  ;;  %1532 = vmatmul.mubr.msk.f32.gmra.mrb[26].mxu1 %vm244_vm9, %v2148_v49 }
  0xb9   :  { %v217_v12 = vpop.permute.xlu1 %216  ;;  %v214_v13 = vpop.permute.xlu0 %213 }
  0xba   :  { %vm246_vm10 = vcmp.eq.s32.totalorder %v2458_v45, %v214_v13  ;;  %vm247_vm11 = vcmp.eq.s32.totalorder %v2461_v46, %v214_v13  ;;  %vm249_vm12 = vcmp.eq.s32.totalorder %v2461_v46, %v217_v12  ;;  %vm248_vm15 = vcmp.eq.s32.totalorder %v2458_v45, %v217_v12 }
  0xbb   :  { %1533 = vmatprep.mubr.msk.f32.mxu1 %vm247_vm11, %v2148_v49  ;;  %v2080_v12 = vpack.c.bf16 %v1091_v8, %v1090_v7 }
  0xbc   :  { %1534 = vmatmul.mubr.msk.f32.gmra.mrb[28].mxu1 %vm246_vm10, %v2148_v49 }
  0xbd   :  { %v120_v14 = vpop.permute.xlu1 %119  ;;  %1535 = vmatprep.mubr.msk.f32.mxu1 %vm249_vm12, %v2148_v49  ;;  %v117_v15 = vpop.permute.xlu0 %116 }
  0xbe   :  { %vm136_vm13 = vcmp.eq.s32.totalorder %v2458_v45, %v120_v14  ;;  %vm135_vm14 = vcmp.eq.s32.totalorder %v2458_v45, %v117_v15 }
  0xbf   :  { %1850 = vmatprep.mubr.msk.f32.mxu0 %vm135_vm14, %v2148_v49 }
  0xc0   :  { %1851 = vmatmul.mubr.msk.f32.gmra.mrb[14].mxu0 %vm136_vm13, %v2148_v49  ;;  %1536 = vmatmul.mubr.msk.f32.gmra.mrb[30].mxu1 %vm248_vm15, %v2148_v49 }
 0x157   :  { %v1668_v25 = vpop.f32.mrb[0].mxu1 }
 0x158   :  { %v1669_v26 = vpop.f32.mrb[1].mxu1 }
 0x159   :  { %v1670_v27 = vadd.f32 %v1669_v26, %v1668_v25 }
 0x15b   :  { %v1671_v30 = vpop.f32.mrb[2].mxu1  ;;  %1861 = vmatprep.mubr.msk.f32.mxu0 %vm660_vm0, %v1670_v27 }
 0x15c   :  { %v1672_v31 = vpop.f32.mrb[3].mxu1 }
 0x15d   :  { %v1673_v32 = vadd.f32 %v1672_v31, %v1671_v30 }
 0x15f   :  { %v1674_v34 = vpop.f32.mrb[4].mxu1  ;;  %1862 = vmatmul.mubr.msk.f32.vlgmr.msra.gmra.mrb[16].mxu0 %vm660_vm0, %v1673_v32 }
 0x160   :  { %v1675_v35 = vpop.f32.mrb[5].mxu1  ;;  %2067 = vmatpush3.bf16.msra.mxu0 %v2064_v21 }
 0x161   :  { %v1676_v36 = vadd.f32 %v1675_v35, %v1674_v34  ;;  %2069 = vmatprep.subr.bf16.mxu0 %v2068_v33  ;;  %v1092_v34 = vld [vmem:[%s2723_s7 + $0x30] sm:$0xff]  ;;  %v1093_v35 = vld [vmem:[%s2723_s7 + $0x38] sm:$0xff] }
 0x163   :  { %v1677_v37 = vpop.f32.mrb[6].mxu1  ;;  %1864 = vmatprep.mubr.msk.f32.mxu0 %vm660_vm0, %v1676_v36  ;;  %v2084_v36 = vpack.c.bf16 %v1093_v35, %v1092_v34 }
 0x164   :  { %v1678_v38 = vpop.f32.mrb[7].mxu1  ;;  %2071 = vmatpush3.bf16.msra.mxu0 %v2068_v33 }
 0x165   :  { %v1679_v39 = vadd.f32 %v1678_v38, %v1677_v37  ;;  %v2640_v37 = vld [vmem:[%s2724_s6] ss:$0 sm:$0xff] }
 0x167   :  { %v1831_v40 = vpop.f32.mrb[0].mxu0  ;;  %v1680_v41 = vpop.f32.mrb[8].mxu1  ;;  %1865 = vmatmul.mubr.msk.f32.gmra.mrb[18].mxu0 %vm660_vm0, %v1679_v39 }
 0x168   :  { %v396_v42 = vpop.f32.mrb[1].mxu0  ;;  %v1681_v43 = vpop.f32.mrb[9].mxu1 }
 0x169   :  { %v1682_v44 = vadd.f32 %v1681_v43, %v1680_v41 }
 0x16b   :  { %v1834_v45 = vpop.f32.mrb[2].mxu0  ;;  %v1683_v46 = vpop.f32.mrb[10].mxu1  ;;  %1867 = vmatprep.mubr.msk.f32.mxu0 %vm660_vm0, %v1682_v44 }
 0x16c   :  { %v406_v47 = vpop.f32.mrb[3].mxu0  ;;  %v1684_v48 = vpop.f32.mrb[11].mxu1 }
 0x16d   :  { %v1685_v49 = vadd.f32 %v1684_v48, %v1683_v46 }
 0x16f   :  { %v1837_v50 = vpop.f32.mrb[4].mxu0  ;;  %v1686_v51 = vpop.f32.mrb[12].mxu1  ;;  %1868 = vmatmul.mubr.msk.f32.gmra.mrb[20].mxu0 %vm660_vm0, %v1685_v49 }
 0x170   :  { %v416_v52 = vpop.f32.mrb[5].mxu0  ;;  %v1687_v53 = vpop.f32.mrb[13].mxu1 }
 0x171   :  { %v1688_v54 = vadd.f32 %v1687_v53, %v1686_v51 }
 0x173   :  { %v1840_v55 = vpop.f32.mrb[6].mxu0  ;;  %v1689_v56 = vpop.f32.mrb[14].mxu1  ;;  %1870 = vmatprep.mubr.msk.f32.mxu0 %vm660_vm0, %v1688_v54 }
 0x174   :  { %v426_v57 = vpop.f32.mrb[7].mxu0  ;;  %v1690_v58 = vpop.f32.mrb[15].mxu1 }
 0x175   :  { %v1691_v59 = vadd.f32 %v1690_v58, %v1689_v56 }
 0x177   :  { %v1692_v60 = vpop.f32.mrb[16].mxu1  ;;  %1871 = vmatmul.mubr.msk.f32.gmra.mrb[22].mxu0 %vm660_vm0, %v1691_v59 }
 0x178   :  { %v1693_v61 = vpop.f32.mrb[17].mxu1  ;;  %1893 = vmatprep.mubr.msk.f32.mxu0 %vm660_vm0, %v396_v42 }
 0x179   :  { %v1694_v62 = vadd.f32 %v1693_v61, %v1692_v60 }
 0x17b   :  { %v1843_v1 = vpop.f32.mrb[8].mxu0  ;;  %v1695_v2 = vpop.f32.mrb[18].mxu1  ;;  %1873 = vmatprep.mubr.msk.f32.mxu1 %vm660_vm0, %v1694_v62  ;;  %1894 = vmatmul.mubr.msk.f32.vlgmr.msra.gmra.mrb[16].mxu0 %vm660_vm0, %v1831_v40 }
 0x17c   :  { %v436_v3 = vpop.f32.mrb[9].mxu0  ;;  %v1696_v4 = vpop.f32.mrb[19].mxu1  ;;  %1896 = vmatprep.mubr.msk.f32.mxu0 %vm660_vm0, %v406_v47 }
 0x17d   :  { %v1697_v5 = vadd.f32 %v1696_v4, %v1695_v2 }
 0x17f   :  { %v1698_v9 = vpop.f32.mrb[20].mxu1  ;;  %1874 = vmatmul.mubr.msk.f32.vlgmr.msra.gmra.mrb[32].mxu1 %vm660_vm0, %v1697_v5  ;;  %1897 = vmatmul.mubr.msk.f32.gmra.mrb[18].mxu0 %vm660_vm0, %v1834_v45 }
 0x180   :  { %v1699_v10 = vpop.f32.mrb[21].mxu1  ;;  %1899 = vmatprep.mubr.msk.f32.mxu0 %vm660_vm0, %v416_v52  ;;  %2075 = vmatpush3.bf16.msra.mxu1 %v2577_v24 }
 0x181   :  { %v1700_v11 = vadd.f32 %v1699_v10, %v1698_v9  ;;  %2077 = vmatprep.subr.bf16.mxu1 %v2076_v6 }
 0x183   :  { %v1846_v13 = vpop.f32.mrb[10].mxu0  ;;  %v1701_v14 = vpop.f32.mrb[22].mxu1  ;;  %1876 = vmatprep.mubr.msk.f32.mxu1 %vm660_vm0, %v1700_v11  ;;  %1900 = vmatmul.mubr.msk.f32.gmra.mrb[20].mxu0 %vm660_vm0, %v1837_v50 }
 0x184   :  { %v446_v15 = vpop.f32.mrb[11].mxu0  ;;  %v1702_v16 = vpop.f32.mrb[23].mxu1  ;;  %1902 = vmatprep.mubr.msk.f32.mxu0 %vm660_vm0, %v426_v57  ;;  %2079 = vmatpush3.bf16.msra.mxu1 %v2076_v6 }
 0x185   :  { %v1703_v17 = vadd.f32 %v1702_v16, %v1701_v14  ;;  %2081 = vmatprep.subr.bf16.mxu1 %v2080_v12 }
 0x187   :  { %v1704_v18 = vpop.f32.mrb[24].mxu1  ;;  %1877 = vmatmul.mubr.msk.f32.gmra.mrb[34].mxu1 %vm660_vm0, %v1703_v17  ;;  %1903 = vmatmul.mubr.msk.f32.gmra.mrb[22].mxu0 %vm660_vm0, %v1840_v55 }
 0x188   :  { %v1705_v19 = vpop.f32.mrb[25].mxu1  ;;  %1905 = vmatprep.mubr.msk.f32.mxu0 %vm660_vm0, %v436_v3  ;;  %2083 = vmatpush3.bf16.msra.mxu1 %v2080_v12 }
 0x189   :  { %v1706_v20 = vadd.f32 %v1705_v19, %v1704_v18  ;;  %2085 = vmatprep.subr.bf16.mxu1 %v2084_v36 }
 0x18b   :  { %v1849_v21 = vpop.f32.mrb[12].mxu0  ;;  %v1707_v22 = vpop.f32.mrb[26].mxu1  ;;  %1879 = vmatprep.mubr.msk.f32.mxu1 %vm660_vm0, %v1706_v20  ;;  %1906 = vmatmul.mubr.msk.f32.gmra.mrb[24].mxu0 %vm660_vm0, %v1843_v1 }
 0x18c   :  { %v456_v23 = vpop.f32.mrb[13].mxu0  ;;  %v1708_v24 = vpop.f32.mrb[27].mxu1  ;;  %1908 = vmatprep.mubr.msk.f32.mxu0 %vm660_vm0, %v446_v15  ;;  %2087 = vmatpush3.bf16.msra.mxu1 %v2084_v36 }
 0x18d   :  { %v1709_v25 = vadd.f32 %v1708_v24, %v1707_v22 }
 0x18f   :  { %v1710_v26 = vpop.f32.mrb[28].mxu1  ;;  %1880 = vmatmul.mubr.msk.f32.gmra.mrb[36].mxu1 %vm660_vm0, %v1709_v25  ;;  %1909 = vmatmul.mubr.msk.f32.gmra.mrb[26].mxu0 %vm660_vm0, %v1846_v13 }
 0x190   :  { %v1711_v27 = vpop.f32.mrb[29].mxu1  ;;  %1911 = vmatprep.mubr.msk.f32.mxu0 %vm660_vm0, %v456_v23 }
 0x191   :  { %v1712_v28 = vadd.f32 %v1711_v27, %v1710_v26 }
 0x193   :  { %v1852_v29 = vpop.f32.mrb[14].mxu0  ;;  %v1713_v30 = vpop.f32.mrb[30].mxu1  ;;  %1882 = vmatprep.mubr.msk.f32.mxu1 %vm660_vm0, %v1712_v28  ;;  %1912 = vmatmul.mubr.msk.f32.gmra.mrb[28].mxu0 %vm660_vm0, %v1849_v21 }
 0x194   :  { %v466_v31 = vpop.f32.mrb[15].mxu0  ;;  %v1714_v32 = vpop.f32.mrb[31].mxu1 }
 0x195   :  { %v1715_v33 = vadd.f32 %v1714_v32, %v1713_v30  ;;  %1914 = vmatprep.mubr.msk.f32.mxu0 %vm660_vm0, %v466_v31 }
 0x197   :  { %1883 = vmatmul.mubr.msk.f32.gmra.mrb[38].mxu1 %vm660_vm0, %v1715_v33  ;;  %1915 = vmatmul.mubr.msk.f32.gmra.mrb[30].mxu0 %vm660_vm0, %v1852_v29 }
 0x24e   :  { %v1895_v38 = vpop.f32.mrb[16].mxu0 }
 0x24f   :  { %v1055_v39 = vadd.f32 %v1895_v38, %v2640_v37  ;;  %v968_v40 = vpop.f32.mrb[17].mxu0 }
 0x250   :  { %v1054_v41 = vadd.f32 %v2640_v37, %v968_v40  ;;  %v2151_v40 = vmov 0.0  }
 0x251   :  { %v1071_v45 = vmax.f32 %v1055_v39, 0.0  ;;  %v2149_v39 = vmov 0.0|0.0   ;;  %1989 = vmatprep.mubr.msk.f32.mxu0 %vm2150_vm2, %v2151_v40 }
 0x252   :  { %v1070_v42 = vmax.f32 %v1054_v41, 0.0  ;;  %v1875_v43 = vpop.f32.mrb[32].mxu1  ;;  %v1898_v44 = vpop.f32.mrb[18].mxu0  ;;  %2088 = vmatprep.subr.bf16.mxu0 %v2149_v39 }
 0x253   :  { %v1057_v46 = vadd.f32 %v1898_v44, %v2640_v37  ;;  %v815_v47 = vpop.f32.mrb[33].mxu1  ;;  %v978_v48 = vpop.f32.mrb[19].mxu0 }
 0x254   :  { %v1056_v49 = vadd.f32 %v2640_v37, %v978_v48  ;;  %1933 = vmatprep.mubr.msk.f32.mxu1 %vm1101_vm1, %v1070_v42 }
 0x255   :  { %1934 = vmatmul.mubr.msk.f32.vlgmr.msra.gmra.mrb[40].mxu1 %vm1101_vm1, %v1071_v45  ;;  %v1073_v52 = vmax.f32 %v1057_v46, 0.0 }
 0x256   :  { %v1072_v50 = vmax.f32 %v1056_v49, 0.0  ;;  %v1901_v51 = vpop.f32.mrb[20].mxu0 }
 0x257   :  { %v1059_v53 = vadd.f32 %v1901_v51, %v2640_v37  ;;  %v988_v54 = vpop.f32.mrb[21].mxu0 }
 0x258   :  { %v1058_v55 = vadd.f32 %v2640_v37, %v988_v54  ;;  %1936 = vmatprep.mubr.msk.f32.mxu1 %vm1101_vm1, %v1072_v50 }
 0x259   :  { %1937 = vmatmul.mubr.msk.f32.gmra.mrb[42].mxu1 %vm1101_vm1, %v1073_v52  ;;  %v1075_v59 = vmax.f32 %v1059_v53, 0.0 }
 0x25a   :  { %v1074_v56 = vmax.f32 %v1058_v55, 0.0  ;;  %v1878_v57 = vpop.f32.mrb[34].mxu1  ;;  %v1904_v58 = vpop.f32.mrb[22].mxu0 }
 0x25b   :  { %v1061_v60 = vadd.f32 %v1904_v58, %v2640_v37  ;;  %v825_v61 = vpop.f32.mrb[35].mxu1  ;;  %v998_v62 = vpop.f32.mrb[23].mxu0 }
 0x25c   :  { %v1060_v63 = vadd.f32 %v2640_v37, %v998_v62  ;;  %1939 = vmatprep.mubr.msk.f32.mxu1 %vm1101_vm1, %v1074_v56 }
 0x25d   :  { %1940 = vmatmul.mubr.msk.f32.gmra.mrb[44].mxu1 %vm1101_vm1, %v1075_v59  ;;  %v1077_v2 = vmax.f32 %v1061_v60, 0.0 }
 0x25e   :  { %v1076_v0 = vmax.f32 %v1060_v63, 0.0  ;;  %v1907_v1 = vpop.f32.mrb[24].mxu0 }
 0x25f   :  { %v1014_v3 = vadd.f32 %v1907_v1, %v1875_v43  ;;  %v1008_v4 = vpop.f32.mrb[25].mxu0 }
 0x260   :  { %v1009_v5 = vadd.f32 %v1008_v4, %v815_v47  ;;  %1942 = vmatprep.mubr.msk.f32.mxu1 %vm1101_vm1, %v1076_v0 }
 0x261   :  { %v1063_v6 = vadd.f32 %v2640_v37, %v1014_v3  ;;  %1943 = vmatmul.mubr.msk.f32.gmra.mrb[46].mxu1 %vm1101_vm1, %v1077_v2 }
 0x262   :  { %v1062_v7 = vadd.f32 %v2640_v37, %v1009_v5  ;;  %v1881_v8 = vpop.f32.mrb[36].mxu1  ;;  %v1910_v9 = vpop.f32.mrb[26].mxu0 }
 0x263   :  { %v1024_v10 = vadd.f32 %v1910_v9, %v1878_v57  ;;  %v835_v11 = vpop.f32.mrb[37].mxu1  ;;  %v1018_v12 = vpop.f32.mrb[27].mxu0  ;;  %v1079_v15 = vmax.f32 %v1063_v6, 0.0 }
 0x264   :  { %v1078_v13 = vmax.f32 %v1062_v7, 0.0  ;;  %v1019_v14 = vadd.f32 %v1018_v12, %v825_v61 }
 0x265   :  { %v1065_v16 = vadd.f32 %v2640_v37, %v1024_v10 }
 0x266   :  { %v1064_v17 = vadd.f32 %v2640_v37, %v1019_v14  ;;  %v1913_v18 = vpop.f32.mrb[28].mxu0  ;;  %1945 = vmatprep.mubr.msk.f32.mxu1 %vm1101_vm1, %v1078_v13 }
 0x267   :  { %v1034_v19 = vadd.f32 %v1913_v18, %v1881_v8  ;;  %v1028_v20 = vpop.f32.mrb[29].mxu0  ;;  %1946 = vmatmul.mubr.msk.f32.gmra.mrb[48].mxu1 %vm1101_vm1, %v1079_v15  ;;  %v1081_v23 = vmax.f32 %v1065_v16, 0.0 }
 0x268   :  { %v1080_v21 = vmax.f32 %v1064_v17, 0.0  ;;  %v1029_v22 = vadd.f32 %v1028_v20, %v835_v11 }
 0x269   :  { %v1067_v24 = vadd.f32 %v2640_v37, %v1034_v19 }
 0x26a   :  { %v1066_v25 = vadd.f32 %v2640_v37, %v1029_v22  ;;  %v1884_v26 = vpop.f32.mrb[38].mxu1  ;;  %v1916_v27 = vpop.f32.mrb[30].mxu0  ;;  %1948 = vmatprep.mubr.msk.f32.mxu1 %vm1101_vm1, %v1080_v21 }
 0x26b   :  { %v1044_v28 = vadd.f32 %v1916_v27, %v1884_v26  ;;  %v845_v29 = vpop.f32.mrb[39].mxu1  ;;  %v1038_v30 = vpop.f32.mrb[31].mxu0  ;;  %1949 = vmatmul.mubr.msk.f32.gmra.mrb[50].mxu1 %vm1101_vm1, %v1081_v23  ;;  %v1083_v33 = vmax.f32 %v1067_v24, 0.0 }
 0x26c   :  { %v1082_v31 = vmax.f32 %v1066_v25, 0.0  ;;  %v1039_v32 = vadd.f32 %v1038_v30, %v845_v29 }
 0x26d   :  { %v1069_v34 = vadd.f32 %v2640_v37, %v1044_v28 }
 0x26e   :  { %v1068_v35 = vadd.f32 %v2640_v37, %v1039_v32  ;;  %1951 = vmatprep.mubr.msk.f32.mxu1 %vm1101_vm1, %v1082_v31  ;;  %v1570_v37 = vld [vmem:[%s2725_s8] ss:$0 sm:$0xff] }
 0x26f   :  { %1952 = vmatmul.mubr.msk.f32.gmra.mrb[52].mxu1 %vm1101_vm1, %v1083_v33  ;;  %v1085_v38 = vmax.f32 %v1069_v34, 0.0  ;;  %v1311_v34 = vld [vmem:[%s2726_s9] sm:$0x1] }
 0x270   :  { %v1084_v36 = vmax.f32 %v1068_v35, 0.0  ;;  %v1313_v35 = vstv %s2727_s10 }
 0x272   :  { %1954 = vmatprep.mubr.msk.f32.mxu1 %vm1101_vm1, %v1084_v36 }
 0x273   :  { %1955 = vmatmul.mubr.msk.f32.gmra.mrb[54].mxu1 %vm1101_vm1, %v1085_v38 }
 0x328   :  { %v1935_v41 = vpop.f32.mrb[40].mxu1 }
 0x329   :  { %v1222_v42 = vadd.f32 %v1935_v41, %v1570_v37  ;;  %v1216_v43 = vpop.f32.mrb[41].mxu1 }
 0x32a   :  { %v1217_v44 = vadd.f32 %v1570_v37, %v1216_v43 }
 0x32b   :  { %v1296_v45 = vmax.f32 %v1222_v42, 0.0 }
 0x32c   :  { %v1295_v46 = vmax.f32 %v1217_v44, 0.0  ;;  %v1938_v47 = vpop.f32.mrb[42].mxu1 }
 0x32d   :  { %v1232_v48 = vadd.f32 %v1938_v47, %v1570_v37  ;;  %v1226_v49 = vpop.f32.mrb[43].mxu1 }
 0x32e   :  { %v2089_v51 = vpack.c.bf16 %v1296_v45, %v1295_v46  ;;  %v1227_v52 = vadd.f32 %v1570_v37, %v1226_v49 }
 0x32f   :  { %v1298_v53 = vmax.f32 %v1232_v48, 0.0 }
 0x330   :  { %v1297_v54 = vmax.f32 %v1227_v52, 0.0  ;;  %v1941_v55 = vpop.f32.mrb[44].mxu1  ;;  %2091 = vmatpush3.bf16.xpose.msk.msra.mxu0 %vm2680_vm4, %v2089_v51 }
 0x331   :  { %v1242_v56 = vadd.f32 %v1941_v55, %v1570_v37  ;;  %v1236_v57 = vpop.f32.mrb[45].mxu1  ;;  %2092 = vmatprep.subr.bf16.mxu0 %v2149_v39 }
 0x332   :  { %v2093_v58 = vpack.c.bf16 %v1298_v53, %v1297_v54  ;;  %v1237_v59 = vadd.f32 %v1570_v37, %v1236_v57 }
 0x333   :  { %v1300_v60 = vmax.f32 %v1242_v56, 0.0 }
 0x334   :  { %v1299_v61 = vmax.f32 %v1237_v59, 0.0  ;;  %v1944_v62 = vpop.f32.mrb[46].mxu1 }
 0x335   :  { %v1252_v63 = vadd.f32 %v1944_v62, %v1570_v37  ;;  %v1246_v0 = vpop.f32.mrb[47].mxu1 }
 0x336   :  { %v2097_v1 = vpack.c.bf16 %v1300_v60, %v1299_v61  ;;  %v1247_v2 = vadd.f32 %v1570_v37, %v1246_v0 }
 0x337   :  { %v1302_v3 = vmax.f32 %v1252_v63, 0.0 }
 0x338   :  { %v1301_v4 = vmax.f32 %v1247_v2, 0.0  ;;  %2095 = vmatpush3.bf16.xpose.msk.msra.mxu0 %vm2680_vm4, %v2093_v58 }
 0x339   :  { %2096 = vmatprep.subr.bf16.mxu0 %v2149_v39 }
 0x33a   :  { %v2101_v5 = vpack.c.bf16 %v1302_v3, %v1301_v4  ;;  %v1947_v6 = vpop.f32.mrb[48].mxu1 }
 0x33b   :  { %v1262_v7 = vadd.f32 %v1947_v6, %v1570_v37  ;;  %v1256_v8 = vpop.f32.mrb[49].mxu1 }
 0x33c   :  { %v1257_v9 = vadd.f32 %v1570_v37, %v1256_v8 }
 0x33d   :  { %v1304_v10 = vmax.f32 %v1262_v7, 0.0 }
 0x33e   :  { %v1303_v11 = vmax.f32 %v1257_v9, 0.0  ;;  %v1950_v12 = vpop.f32.mrb[50].mxu1 }
 0x33f   :  { %v1272_v13 = vadd.f32 %v1950_v12, %v1570_v37  ;;  %v1266_v14 = vpop.f32.mrb[51].mxu1 }
 0x340   :  { %v2105_v15 = vpack.c.bf16 %v1304_v10, %v1303_v11  ;;  %v1267_v16 = vadd.f32 %v1570_v37, %v1266_v14  ;;  %2099 = vmatpush3.bf16.xpose.msk.msra.mxu0 %vm2680_vm4, %v2097_v1 }
 0x341   :  { %v1306_v17 = vmax.f32 %v1272_v13, 0.0  ;;  %2100 = vmatprep.subr.bf16.mxu0 %v2149_v39 }
 0x342   :  { %v1305_v18 = vmax.f32 %v1267_v16, 0.0  ;;  %v1953_v19 = vpop.f32.mrb[52].mxu1 }
 0x343   :  { %v1282_v20 = vadd.f32 %v1953_v19, %v1570_v37  ;;  %v1276_v21 = vpop.f32.mrb[53].mxu1 }
 0x344   :  { %v2109_v22 = vpack.c.bf16 %v1306_v17, %v1305_v18  ;;  %v1277_v23 = vadd.f32 %v1570_v37, %v1276_v21 }
 0x345   :  { %v1308_v24 = vmax.f32 %v1282_v20, 0.0 }
 0x346   :  { %v1307_v25 = vmax.f32 %v1277_v23, 0.0  ;;  %v1956_v26 = vpop.f32.mrb[54].mxu1 }
 0x347   :  { %v1292_v27 = vadd.f32 %v1956_v26, %v1570_v37  ;;  %v1286_v28 = vpop.f32.mrb[55].mxu1 }
 0x348   :  { %v2113_v29 = vpack.c.bf16 %v1308_v24, %v1307_v25  ;;  %v1287_v30 = vadd.f32 %v1570_v37, %v1286_v28  ;;  %2103 = vmatpush3.bf16.xpose.msk.msra.mxu0 %vm2680_vm4, %v2101_v5 }
 0x349   :  { %v1310_v31 = vmax.f32 %v1292_v27, 0.0  ;;  %2104 = vmatprep.subr.bf16.mxu0 %v2149_v39 }
 0x34a   :  { %v1309_v32 = vmax.f32 %v1287_v30, 0.0 }
 0x34c   :  { %v2117_v33 = vpack.c.bf16 %v1310_v31, %v1309_v32 }
 0x350   :  { %2107 = vmatpush3.bf16.xpose.msk.msra.mxu0 %vm2680_vm4, %v2105_v15 }
 0x351   :  { %2108 = vmatprep.subr.bf16.mxu0 %v2149_v39 }
 0x358   :  { %2111 = vmatpush3.bf16.xpose.msk.msra.mxu0 %vm2680_vm4, %v2109_v22 }
 0x359   :  { %2112 = vmatprep.subr.bf16.mxu0 %v2149_v39 }
 0x360   :  { %2115 = vmatpush3.bf16.xpose.msk.msra.mxu0 %vm2680_vm4, %v2113_v29 }
 0x361   :  { %2116 = vmatprep.subr.bf16.mxu0 %v2149_v39 }
 0x368   :  { %2119 = vmatpush3.bf16.xpose.msk.msra.mxu0 %vm2680_vm4, %v2117_v33 }
 0x36f   :  { %1990 = vmatmul.mubr.msk.f32.vlgmr.msra.gmra.mrb[32].mxu0 %vm1314_vm3, %v1311_v34 }
 0x442   :  { %v1432_v36 = vpop.f32.mrb[32].mxu0 }
 0x443   :  { %v1433_v38 = vadd.f32 %v1432_v36, %v1313_v35  ;;  %v1991_v40 = vpop.f32.mrb[33].mxu0 }
 0x445   :  { %1436 = vst [vmem:[%s2728_s11] sm:$0x1] %v1433_v38 }

</bundles_post_ra>
